<compile_context>
chip_gen: v7x
topology: tpu7x:2x2x1
jax: 0.10.0
libtpu: 0.0.40
codegen_flags: <defaults>
</compile_context>

<pallas_src>
import functools
import math

import jax
import jax.numpy as jnp
from jax.experimental import pallas as pl
from jax.experimental.pallas import tpu as pltpu


# ----------------------------- kernel -----------------------------------------

def _patch_embed_kernel(p_ref, w_ref, pe_ref, o_ref, *, P, W, Lf):
    """Fused circular-tap construction + MXU matmul + PE add.

    p_ref : (S, Lf, W)     unfolded patches; G = W/P patches folded per row
    w_ref : (3W, Dout)     tap-stacked, G-block-banded conv weight
    pe_ref: (Lf, Dout)     positional embedding, f32 (constant block)
    o_ref : (S, Lf, Dout)  output block (Dout >= 128 whenever folding applies)
    """
    w = w_ref[...]
    for j in range(Lf):                                    # static unroll; Lf is small
        cur = p_ref[:, j, :]                               # (S, W)
        nxt_head = p_ref[:, (j + 1) % Lf, :P]              # first patch of next row
        prv_tail = p_ref[:, (j - 1) % Lf, W - P:]          # last patch of prev row
        if W == P:                                         # G == 1: whole patch per row
            nxt, prv = nxt_head, prv_tail
        else:                                              # shift flat stream by +/-P
            nxt = jnp.concatenate([cur[:, P:], nxt_head], axis=-1)
            prv = jnp.concatenate([prv_tail, cur[:, :W - P]], axis=-1)
        taps = jnp.concatenate([prv, cur, nxt], axis=-1)   # (S, 3W)
        acc = jnp.dot(taps, w, preferred_element_type=jnp.float32)   # (S, Dout) f32
        o_ref[:, j, :] = (acc + pe_ref[j:j + 1, :]).astype(o_ref.dtype)


# ----------------------------- helpers -----------------------------------------

def _round_up(x, m):
    return ((x + m - 1) // m) * m


def _lane(n):
    return _round_up(n, 128)


def _sublane(n, itemsize):
    return _round_up(n, max(8, 32 // itemsize))


def _vmem_capacity_bytes():
    try:
        cap = int(getattr(pltpu.get_tpu_info(), "vmem_capacity_bytes", 0))
        if cap > 0:
            return cap
    except Exception:
        pass
    return 64 << 20            # conservative fallback: v7x physical VMEM


def _choose_block_series(N, Lf, W, Dout, c_item, o_item, budget):
    """Largest #series per grid step under the VMEM budget, with >= 2 grid steps."""
    per_series = (
        2 * _sublane(Lf, c_item) * _lane(W) * c_item          # patches block (x2 buffers)
        + 2 * _sublane(Lf, o_item) * _lane(Dout) * o_item     # output block  (x2 buffers)
        + 4 * _lane(W) * c_item                                # cur / prv / nxt + slack
        + _lane(3 * W) * c_item                                # taps row
        + 2 * _lane(Dout) * 4                                  # f32 accumulator + slack
    )
    fixed = (
        2 * _sublane(3 * W, c_item) * _lane(Dout) * c_item     # weight (x2 buffers)
        + 2 * _sublane(Lf, 4) * _lane(Dout) * 4                # positional embedding
        + (1 << 20)                                            # Mosaic internal scratch
    )
    s = max(1, (budget - fixed) // per_series)
    if N >= 2:
        s = min(s, -(-N // 2))      # >= 2 grid steps so both v7x TensorCores get work
    return int(max(1, min(s, N)))


def make_positional_table(d_model, max_len=5000):
    position = jnp.arange(max_len, dtype=jnp.float32)[:, None]
    div_term = jnp.exp(jnp.arange(0, d_model, 2, dtype=jnp.float32)
                       * (-math.log(10000.0) / d_model))
    pe = jnp.zeros((max_len, d_model), jnp.float32)
    pe = pe.at[:, 0::2].set(jnp.sin(position * div_term))
    pe = pe.at[:, 1::2].set(jnp.cos(position * div_term))
    return pe


def kaiming_conv_weight(key, d_model, patch_len, ksize=3):
    # kaiming_normal_(mode='fan_in', nonlinearity='leaky_relu') on [D, P, K]
    fan_in = patch_len * ksize
    gain = math.sqrt(2.0 / (1.0 + 0.01 ** 2))
    std = gain / math.sqrt(fan_in)
    return std * jax.random.normal(key, (d_model, patch_len, ksize), jnp.float32)


# ----------------------------- forward ------------------------------------------

def patch_embedding(x, conv_w, pe_table, patch_len, stride, padding, *,
                    compute_dtype=jnp.bfloat16, out_dtype=None,
                    vmem_block_budget=None):
    """x: [B, n_vars, seq_len].  Returns ([B*n_vars, L, d_model], n_vars)."""
    B, n_vars, seq_len = x.shape
    D, P, K = conv_w.shape
    assert K == 3 and P == patch_len
    out_dtype = x.dtype if out_dtype is None else out_dtype
    L = (seq_len + padding - patch_len) // stride + 1
    N = B * n_vars

    # Fused ReplicationPad1d((0, padding)) + unfold: one small XLA gather.
    # The 3x circular-tap expansion is built in-kernel, never materialized in HBM.
    idx = stride * jnp.arange(L)[:, None] + jnp.arange(P)[None, :]
    idx = jnp.minimum(idx, seq_len - 1)                       # right replication pad
    patches = x[:, :, idx].reshape(N, L, P).astype(compute_dtype)

    # Lane-folding factor: fold G patches per output row so stores stay >=128 lanes.
    if D >= 128:
        G = 1
    else:
        G = L
        for g in range(1, L + 1):
            if L % g == 0 and g * D >= 128:
                G = g
                break
    Lf, W, Dout = L // G, G * P, G * D
    patches = patches.reshape(N, Lf, W)                       # same bytes, no movement

    # Tap-stacked, G-block-banded conv weight:
    #   w_band[t*W + g*P + p, g*D + d] = conv_w[d, p, t]
    w_t = jnp.transpose(conv_w, (2, 1, 0)).astype(jnp.float32)        # (3, P, D)
    eye_g = jnp.eye(G, dtype=jnp.float32)
    w_band = (eye_g[None, :, None, :, None] * w_t[:, None, :, None, :]
              ).reshape(3 * W, Dout).astype(compute_dtype)
    pe = pe_table[:L].astype(jnp.float32).reshape(Lf, Dout)           # fetched once

    c_item = jnp.dtype(compute_dtype).itemsize
    o_item = jnp.dtype(out_dtype).itemsize
    cap = _vmem_capacity_bytes()
    budget = (vmem_block_budget if vmem_block_budget is not None
              else max(8 << 20, min(cap // 4, 40 << 20)))
    vmem_limit = int(min(3 * cap // 4, 96 << 20))
    S = _choose_block_series(N, Lf, W, Dout, c_item, o_item, budget)

    cost = pl.CostEstimate(
        flops=2 * N * Lf * (3 * W) * Dout,
        transcendentals=0,
        bytes_accessed=int(N * Lf * W * c_item + 3 * W * Dout * c_item
                           + Lf * Dout * 4 + N * Lf * Dout * o_item))

    kernel = functools.partial(_patch_embed_kernel, P=P, W=W, Lf=Lf)
    out = pl.pallas_call(
        kernel,
        out_shape=jax.ShapeDtypeStruct((N, Lf, Dout), out_dtype),
        grid_spec=pltpu.PrefetchScalarGridSpec(
            num_scalar_prefetch=0,
            grid=(pl.cdiv(N, S),),
            in_specs=[
                pl.BlockSpec((S, Lf, W), lambda i: (i, 0, 0)),
                # constant index_maps: Pallas fetches these blocks only once
                # (their x2-buffer footprint is accounted in the VMEM budget).
                pl.BlockSpec((3 * W, Dout), lambda i: (0, 0)),
                pl.BlockSpec((Lf, Dout), lambda i: (0, 0)),
            ],
            out_specs=pl.BlockSpec((S, Lf, Dout), lambda i: (i, 0, 0)),
        ),
        compiler_params=pltpu.CompilerParams(
            dimension_semantics=("parallel",),
            vmem_limit_bytes=vmem_limit),
        cost_estimate=cost,
    )(patches, w_band, pe)

    out = out.reshape(N, L, D)
    # TODO(synk): nn.Dropout treated as identity (eval / inference mode).
    return out, n_vars


# ----------------------------- reference ----------------------------------------

def reference(x, conv_w, pe_table, patch_len, stride, padding):
    """Pure-JAX reference mirroring the PyTorch forward."""
    B, n_vars, seq_len = x.shape
    x_pad = jnp.concatenate(
        [x, jnp.repeat(x[:, :, -1:], padding, axis=-1)], axis=-1)
    L = (seq_len + padding - patch_len) // stride + 1
    idx = stride * jnp.arange(L)[:, None] + jnp.arange(patch_len)[None, :]
    patches = x_pad[:, :, idx].reshape(B * n_vars, L, patch_len)
    w = jnp.transpose(conv_w, (2, 1, 0))               # [3, P, D]
    out = sum(
        jnp.einsum('nlp,pd->nld', jnp.roll(patches, 1 - k, axis=1), w[k])
        for k in range(3))
    return out + pe_table[:L][None]


if __name__ == "__main__":
    # module hyper-params (dropout treated as identity / eval mode)
    patch_len, stride, padding = 8, 4, 4
    B, n_vars, seq_len = 2, 4, 16
    L = (seq_len + padding - patch_len) // stride + 1

    key = jax.random.PRNGKey(0)
    kx, kw_small, kw_big = jax.random.split(key, 3)
    x = jax.random.normal(kx, (B, n_vars, seq_len), jnp.float32)

    # d_model=32 exercises the G-folded lane-dense path (G=4, Dout=128);
    # d_model=128 exercises the natural D-last path (G=1).
    for d_model, kw in ((32, kw_small), (128, kw_big)):
        conv_w = kaiming_conv_weight(kw, d_model, patch_len)
        pe_table = make_positional_table(d_model)
        ref = reference(x, conv_w, pe_table, patch_len, stride, padding)

        # f32 streaming path: exact parity with the reference.
        out, nv = patch_embedding(x, conv_w, pe_table, patch_len, stride, padding,
                                  compute_dtype=jnp.float32)
        out = jax.block_until_ready(out)
        assert out.shape == ref.shape == (B * n_vars, L, d_model)
        assert nv == n_vars
        assert jnp.allclose(out, ref, atol=1e-4, rtol=1e-4)

        # default bf16 streaming path (f32 accumulation + f32 PE add).
        out_bf, _ = patch_embedding(x, conv_w, pe_table, patch_len, stride, padding)
        out_bf = jax.block_until_ready(out_bf)
        assert jnp.allclose(out_bf, ref, atol=1e-1, rtol=1e-1)

    print("KERNEL_OK")
</pallas_src>

<mosaic_0001>
module attributes {stable_mosaic.version = 11 : i64} {
  func.func @_patch_embed_kernel(%arg0: i32, %arg1: memref<4x1x32xf32, #tpu.memory_space<vmem>>, %arg2: memref<96x128xf32, #tpu.memory_space<vmem>>, %arg3: memref<1x128xf32, #tpu.memory_space<vmem>>, %arg4: memref<4x1x128xf32, #tpu.memory_space<vmem>>) attributes {dimension_semantics = [#tpu.dimension_semantics<parallel>], iteration_bounds = array<i64: 2>, scalar_prefetch = 0 : i64, scratch_operands = 0 : i64, tpu.core_type = #tpu.core_type<tc>, window_params = [{transform_indices = @transform_0, window_bounds = array<i64: 4, 1, 32>}, {pipeline_mode = #tpu.pipeline_mode<synchronous>, transform_indices = @transform_1, window_bounds = array<i64: 96, 128>}, {pipeline_mode = #tpu.pipeline_mode<synchronous>, transform_indices = @transform_2, window_bounds = array<i64: 1, 128>}, {transform_indices = @transform_3, window_bounds = array<i64: 4, 1, 128>}]} {
    %c0 = arith.constant 0 : index
    %c0_0 = arith.constant 0 : index
    %0 = vector.load %arg2[%c0, %c0_0] : memref<96x128xf32, #tpu.memory_space<vmem>>, vector<96x128xf32>
    %c0_1 = arith.constant 0 : index
    %c0_2 = arith.constant 0 : index
    %c0_3 = arith.constant 0 : index
    %1 = vector.load %arg1[%c0_1, %c0_2, %c0_3] : memref<4x1x32xf32, #tpu.memory_space<vmem>>, vector<4x1x32xf32>
    %2 = vector.shape_cast %1 : vector<4x1x32xf32> to vector<4x32xf32>
    %c0_4 = arith.constant 0 : index
    %c0_5 = arith.constant 0 : index
    %c0_6 = arith.constant 0 : index
    %3 = vector.load %arg1[%c0_4, %c0_5, %c0_6] : memref<4x1x32xf32, #tpu.memory_space<vmem>>, vector<4x1x8xf32>
    %4 = vector.shape_cast %3 : vector<4x1x8xf32> to vector<4x8xf32>
    %c0_7 = arith.constant 0 : index
    %c0_8 = arith.constant 0 : index
    %c24 = arith.constant 24 : index
    %5 = vector.load %arg1[%c0_7, %c0_8, %c24] : memref<4x1x32xf32, #tpu.memory_space<vmem>>, vector<4x1x8xf32>
    %6 = vector.shape_cast %5 : vector<4x1x8xf32> to vector<4x8xf32>
    %7 = vector.extract_strided_slice %2 {offsets = [0, 8], sizes = [4, 24], strides = [1, 1]} : vector<4x32xf32> to vector<4x24xf32>
    %8 = tpu.concatenate %7, %4 in 1 : vector<4x24xf32>, vector<4x8xf32> -> vector<4x32xf32>
    %9 = vector.extract_strided_slice %2 {offsets = [0, 0], sizes = [4, 24], strides = [1, 1]} : vector<4x32xf32> to vector<4x24xf32>
    %10 = tpu.concatenate %6, %9 in 1 : vector<4x8xf32>, vector<4x24xf32> -> vector<4x32xf32>
    %11 = tpu.concatenate %10, %2, %8 in 1 : vector<4x32xf32>, vector<4x32xf32>, vector<4x32xf32> -> vector<4x96xf32>
    %cst = arith.constant dense<0.000000e+00> : vector<4x128xf32>
    %12 = tpu.matmul %11, %0, %cst {dimension_numbers = #tpu.dot_dimension_numbers<[1], [0], [0], [1], [0, 0, 1, 1], [], []>} : vector<4x96xf32>, vector<96x128xf32>, vector<4x128xf32> -> vector<4x128xf32>
    %c0_9 = arith.constant 0 : index
    %c0_10 = arith.constant 0 : index
    %13 = vector.load %arg3[%c0_9, %c0_10] : memref<1x128xf32, #tpu.memory_space<vmem>>, vector<1x128xf32>
    %14 = vector.broadcast %13 : vector<1x128xf32> to vector<4x128xf32>
    %15 = arith.addf %12, %14 : vector<4x128xf32>
    %c0_11 = arith.constant 0 : index
    %c0_12 = arith.constant 0 : index
    %c0_13 = arith.constant 0 : index
    %16 = vector.load %arg4[%c0_11, %c0_12, %c0_13] : memref<4x1x128xf32, #tpu.memory_space<vmem>>, vector<4x1x128xf32>
    %17 = vector.shape_cast %16 : vector<4x1x128xf32> to vector<4x128xf32>
    %18 = vector.shape_cast %15 : vector<4x128xf32> to vector<4x1x128xf32>
    tpu.vector_store %arg4[%c0_11, %c0_12, %c0_13], %18 {strides = array<i32>} : memref<4x1x128xf32, #tpu.memory_space<vmem>>, vector<4x1x128xf32>,
    return
  }
  func.func @transform_0(%arg0: i32) -> (i32, i32, i32) {
    %c0_i32 = arith.constant 0 : i32
    %c0_i32_0 = arith.constant 0 : i32
    %c0_i32_1 = arith.constant 0 : i32
    return %arg0, %c0_i32, %c0_i32_0 : i32, i32, i32
  }
  func.func @transform_1(%arg0: i32) -> (i32, i32) {
    %c0_i32 = arith.constant 0 : i32
    %c0_i32_0 = arith.constant 0 : i32
    %c0_i32_1 = arith.constant 0 : i32
    return %c0_i32, %c0_i32_0 : i32, i32
  }
  func.func @transform_2(%arg0: i32) -> (i32, i32) {
    %c0_i32 = arith.constant 0 : i32
    %c0_i32_0 = arith.constant 0 : i32
    %c0_i32_1 = arith.constant 0 : i32
    return %c0_i32, %c0_i32_0 : i32, i32
  }
  func.func @transform_3(%arg0: i32) -> (i32, i32, i32) {
    %c0_i32 = arith.constant 0 : i32
    %c0_i32_0 = arith.constant 0 : i32
    %c0_i32_1 = arith.constant 0 : i32
    return %arg0, %c0_i32, %c0_i32_0 : i32, i32, i32
  }
}

</mosaic_0001>

<bundles_post_ra>
// kernel: tpu_custom_call.1
= control target key start
LH: loop header
LB: loop body
LE: loop exit
PB: predicated region body
PF: predicated region fallthrough
CT: control target
= control target key end

     0   :  { %8 = vsyncpa [#allocation3], 0  ;;  %s1026_s0 = inlined_call_operand.hbm [shape: f32[8,1,32], index: 0, kind: input, shape index: {}]   ;;  %s1027_s1 = inlined_call_operand.hbm [shape: f32[96,128], index: 1, kind: input, shape index: {}]   ;;  %s1028_s2 = inlined_call_operand.vmem [shape: f32[1,128], index: 2, kind: input, shape index: {}]   ;;  %s1029_s3 = inlined_call_operand.hbm [shape: f32[8,1,128], index: 3, kind: output, shape index: {}]  }
   0x1   :  { %10 = vsyncpa [#allocation3 + $0x1], 0 }
   0x2   :  { %11 = vsyncpa [#allocation6], 0 }
   0x3   :  { %12 = vsyncpa [#allocation4], 0 }
   0x4   :  { %14 = vsyncpa [#allocation4 + $0x1], 0  ;;  %s810_s12 = smov 0   ;;  %s812_s13 = smov 0  }
   0x5   :  { %s814_s14 = smov 0   ;;  %s816_s15 = smov 0  }
   0x6 LB: > { %s831_s16 = sadd.s32 4294967295, %s769_s15   ;;  %s488_s17 = sadd.s32 4294967294, %s769_s15   ;;  %s769_s15 = sphi %s816_s15, %s1049_s15   ;;  %s765_s14 = sphi %s814_s14, %s1048_s14   ;;  %s761_s13 = sphi %s812_s13, %s1047_s13   ;;  %s757_s12 = sphi %s810_s12, %s1046_s12  }
   0x7   : > { %p40_p0 = scmp.ne.s32.totalorder %s761_s13, %s757_s12  ;;  %p1030_p1 = scmp.eq.s32.totalorder %s831_s16, 0 }
   0x8   : > { %p112_p3 = scmp.eq.s32.totalorder %s488_s17, 1  ;;  %p489_p5 = scmp.ge.s32.totalorder %s769_s15, 1 }
   0x9   : > { %p840_p4 = por %p1030_p1, %p40_p0  ;;  %p119_p7 = scmp.lt.s32.totalorder %s769_s15, 3 }
   0xa   : > { %p845_p6 = por %p112_p3, %p40_p0  ;;  %s771_s21 = smov [#allocation5]  }
   0xb   : > { %s1033_s18 = scalar_select %p840_p4, 1, 0 }
   0xc   : > { %s1034_s19 = scalar_select %p845_p6, 1, 0 }
   0xd   : > { %p850_p8 = pnand %p489_p5, %p119_p7  ;;  %s131_s22 = sshll.u32 %s771_s21, 4  ;;  %s854_s22 = int_to_ptr.vmem [resolvable:$true] %s131_s22 }
   0xe   : > { %s866_s24 = sadd.s32 1, %s769_s15   ;;  %s27_s25 = sadd.s32 1, %s765_s14 }
   0xf   : > { %s1035_s20 = scalar_select %p850_p8, 1, 0 }
  0x10   : > { %p576_p9 = pneg %p850_p8  ;;  %s24_s26 = ssub.s32 %s769_s15, %s866_s24 }
  0x11   : > { %s641_s29 = scalar_lea.hbm %s1027_s1, 1536 }
  0x12   : > { %p861_p11 = pnand %p576_p9, %p1030_p1  ;;  %p642_p12 = scmp.ne.s32.totalorder %s1027_s1, %s641_s29 }
  0x13   : > { %p648_p5 = scmp.lt.u32.totalorder %s641_s29, %s1027_s1 }
  0x14   : > { %p643_p13 = pneg %p861_p11 }
  0x16   : > { %p644_p0 = pnand %p643_p13, %p642_p12 }
  0x18   : > { %p645_p3 = pneg %p644_p0 }
  0x1a   : > { %p650_p7 = pnand %p648_p5, %p645_p3 }
  0x1c   : > { %653 = shalt.err (!%p650_p7)
}
  0x1d   : > { %s654_s7 = scalar_lea.vmem %s854_s22, 1536  ;;  %p662_p2 = scmp.lt.s32.totalorder %s854_s22, %s854_s22 }
  0x1e   : > { %p655_p9 = scmp.ne.s32.totalorder %s854_s22, %s654_s7  ;;  %p663_p6 = scmp.lt.s32.totalorder %s654_s7, %s654_s7 }
  0x20   : > { %p657_p10 = pnand %p655_p9, %p643_p13  ;;  %p664_p4 = por %p663_p6, %p662_p2 }
  0x22   : > { %p658_p1 = pneg %p657_p10 }
  0x24   : > { %p665_p8 = pnand %p664_p4, %p658_p1 }
  0x26   : > { %668 = shalt.err (!%p665_p8)
}
  0x27   : > { %s772_s8 = smov 128   ;;  %s773_s9 = smov 8  }
  0x28   : > { %579 = dma.hbm_to_vmem [thread:$0]  (!%p861_p11), %s1027_s1, 1536, %s854_s22, [#allocation6], %s772_s8, %s772_s8, %s773_s9  }
  0x29   : > { %p25_p2 = scmp.eq.s32.totalorder %s24_s26, 0  ;;  %p34_p1 = scmp.ne.s32.totalorder %s765_s14, %s761_s13 }
  0x2a   : > { %p35_p4 = scmp.eq.s32.totalorder %s769_s15, 0  ;;  %p589_p6 = scmp.lt.s32.totalorder %s769_s15, 2 }
  0x2b   : > { %s897_s17 = scalar_select %p25_p2, %s765_s14, %s27_s25  }
  0x2c   : > { %p36_p8 = por %p35_p4, %p34_p1  ;;  %p1037_p10 = scmp.eq.s32.totalorder %s831_s16, 1 }
  0x2d   : > { %s148_s27 = sand.u32 1, %s765_s14   ;;  %s508_s28 = sshll.u32 %s769_s15, 6 }
  0x2e   : > { %p901_p12 = por %p1037_p10, %p34_p1  ;;  %s492_s29 = sshll.u32 %s148_s27, 2 }
  0x2f   : > { %s910_s4 = scalar_lea.hbm %s1026_s0, %s508_s28  ;;  %s152_s22 = scalar_lea.vmem [#allocation2], %s492_s29 }
  0x30   : > { %s159_s25 = sshll.u32 %s152_s22, 4  ;;  %p912_p11 = pnand %p589_p6, %p36_p8  ;;  %s916_s25 = int_to_ptr.vmem [resolvable:$true] %s159_s25 }
  0x31   : > { %s918_s5 = scalar_lea.sflag [#allocation3], %s148_s27  ;;  %s669_s6 = scalar_lea.hbm %s910_s4, 64 }
  0x32   : > { %p670_p13 = scmp.ne.s32.totalorder %s910_s4, %s669_s6  ;;  %p671_p0 = pneg %p912_p11 }
  0x33   : > { %s674_s9 = scalar_lea.hbm %s1026_s0, 128  ;;  %p675_p7 = scmp.lt.u32.totalorder %s910_s4, %s1026_s0 }
  0x34   : > { %p672_p3 = pnand %p671_p0, %p670_p13  ;;  %p676_p9 = scmp.lt.u32.totalorder %s674_s9, %s669_s6 }
  0x35   : > { %p678_p1 = scmp.lt.u32.totalorder %s669_s6, %s910_s4 }
  0x36   : > { %p673_p5 = pneg %p672_p3  ;;  %p677_p2 = por %p676_p9, %p675_p7 }
  0x38   : > { %p679_p4 = por %p678_p1, %p677_p2 }
  0x3a   : > { %p680_p6 = pnand %p679_p4, %p673_p5 }
  0x3c   : > { %683 = shalt.err (!%p680_p6)
}
  0x3d   : > { %s684_s27 = scalar_lea.vmem %s916_s25, 64  ;;  %s774_s28 = smov [#allocation2]  }
  0x3e   : > { %p685_p8 = scmp.ne.s32.totalorder %s916_s25, %s684_s27  ;;  %s689_s29 = sshll.u32 %s774_s28, 4  ;;  %s690_s29 = int_to_ptr.vmem [resolvable:$false] %s689_s29 }
  0x3f   : > { %s691_s23 = scalar_lea.vmem %s690_s29, 128  ;;  %p692_p3 = scmp.lt.s32.totalorder %s916_s25, %s690_s29 }
  0x40   : > { %p687_p10 = pnand %p685_p8, %p671_p0  ;;  %p693_p7 = scmp.lt.s32.totalorder %s691_s23, %s684_s27 }
  0x42   : > { %p688_p13 = pneg %p687_p10  ;;  %p694_p9 = por %p693_p7, %p692_p3 }
  0x44   : > { %p695_p2 = pnand %p694_p9, %p688_p13 }
  0x46   : > { %698 = shalt.err (!%p695_p2)
}
  0x47   : > { %s775_s30 = smov 16   ;;  %s776_s22 = smov 1  }
  0x48   : > { %583 = dma.hbm_to_vmem [thread:$0]  (!%p912_p11), %s910_s4, 64, %s916_s25, %s918_s5, %s775_s30, %s775_s30, %s776_s22  }
  0x49   : > { %p1040_p0 = scmp.ne.s32.totalorder %s1035_s20, 0 }
  0x4a   : > { %s949_s6 = sand.u32 (!%p1040_p0), 1, %s761_s13   ;;  %p1041_p5 = scmp.ne.s32.totalorder (!%p1040_p0), %s1033_s18, 0 }
  0x4b   : > { %171 = sbr.rel (%p1040_p0) target bundleno = 572 (0x23c), region = 32  ;;  %s496_s7 = sshll.u32 (!%p1040_p0), %s949_s6, 2 }
  0x4c   : > { %s174_s8 = scalar_lea.sflag (!%p1040_p0), [#allocation3], %s949_s6  ;;  %s177_s9 = scalar_lea.vmem (!%p1040_p0), [#allocation2], %s496_s7 }
  0x52   : > { %744 = dma.done.wait (%p1041_p5), %s174_s8, 64  }
  0x53   : > { %746 = vsyncadd (%p1041_p5), %s174_s8, 4294967232  ;;  %p1042_p11 = scmp.eq.s32.totalorder %s831_s16, 0 }
  0x55   : > { %748 = dma.done.wait (%p1042_p11), [#allocation6], 1536   ;;  %p1043_p1 = pmov %p1042_p11 }
  0x56   : > { %v231_v0 = vlaneseq  ;;  %v777_v1 = vmov 1966171168   ;;  %v218_v6 = vld [vmem:[%s177_s9] sm:$0x1]  ;;  %v219_v7 = vld [vmem:[%s177_s9 + $0x1] sm:$0x1] }
  0x57   : > { %750 = vsyncadd (%p1043_p1), [#allocation6], 4294965760  ;;  %v229_v2 = vunpack.c.l.s4 %v777_v1  ;;  %v220_v8 = vld [vmem:[%s177_s9 + $0x2] sm:$0x1]  ;;  %v221_v9 = vld [vmem:[%s177_s9 + $0x3] sm:$0x1]  ;;  %v226_v10 = vcombine.low %v218_v6, %v219_v7 }
  0x58   : > { %v232_v3 = vshrl.u32 %v231_v0, 7  ;;  %v227_v11 = vcombine.low %v220_v8, %v221_v9  ;;  %v206_v12 = vld [vmem:[#allocation5] sm:$0xff]  ;;  %v207_v13 = vld [vmem:[#allocation5 + $0x8] sm:$0xff]  ;;  %v208_v14 = vld [vmem:[#allocation5 + $0x10] sm:$0xff]  ;;  %v778_v16 = vmov 0.0|0.0   ;;  %s779_s18 = smov 120  }
  0x59   : > { %v230_v4 = vunpack.c.0.s8 %v229_v2  ;;  %550 = vmatprep.subr.bf16.mxu0 %v778_v16  ;;  %v551_v17 = vpack.c.bf16 %v207_v13, %v206_v12  ;;  %v209_v18 = vld [vmem:[#allocation5 + $0x18] sm:$0xff]  ;;  %v210_v22 = vld [vmem:[#allocation5 + $0x20] sm:$0xff]  ;;  %v211_v23 = vld [vmem:[#allocation5 + $0x28] sm:$0xff]  ;;  %s780_s20 = smov 104   ;;  %s781_s4 = smov 24   ;;  %vm784_vm0 = vmmov 0  }
  0x5a   : > { %v554_v20 = vpack.c.bf16 %v209_v18, %v208_v14  ;;  %v557_v25 = vpack.c.bf16 %v211_v23, %v210_v22  ;;  %v212_v26 = vld [vmem:[#allocation5 + $0x30] sm:$0xff]  ;;  %v213_v27 = vld [vmem:[#allocation5 + $0x38] sm:$0xff]  ;;  %s782_s25 = smov 8   ;;  %v214_v29 = vld [vmem:[#allocation5 + $0x40] sm:$0xff]  ;;  %s783_s26 = smov 32   ;;  %v785_v35 = vmov 0.0  }
  0x5b   : > { %v963_v5 = vsub.s32 %v230_v4, %v232_v3  ;;  %552 = vmatpush3.bf16.msra.mxu0 %v551_v17  ;;  %v560_v28 = vpack.c.bf16 %v213_v27, %v212_v26  ;;  %v215_v30 = vld [vmem:[#allocation5 + $0x48] sm:$0xff]  ;;  %v216_v32 = vld [vmem:[#allocation5 + $0x50] sm:$0xff]  ;;  %v217_v33 = vld [vmem:[#allocation5 + $0x58] sm:$0xff]  ;;  %547 = vmatprep.mubr.msk.f32.mxu0 %vm784_vm0, %v785_v35  ;;  %vm256_vm1 = vcmask 195584   ;;  %s786_s5 = smov 64   ;;  %vm264_vm2 = vcmask 64512  }
  0x5c   : > { %553 = vmatprep.subr.bf16.mxu0 %v778_v16  ;;  %v563_v31 = vpack.c.bf16 %v215_v30, %v214_v29  ;;  %v566_v34 = vpack.c.bf16 %v217_v33, %v216_v32  ;;  %vm273_vm3 = vcmask 261120   ;;  %vm275_vm4 = vcmask 523264   ;;  %v499_v46 = vld [vmem:[%s1028_s2] ss:$0 sm:$0xff]  ;;  %s203_s27 = scalar_lea.vmem [#allocation7], %s496_s7  ;;  %s509_s29 = sshll.u32 %s831_s16, 6 }
  0x5d   : > { %v234_v15 = vrot.slane %v226_v10, %v963_v5  ;;  %v241_v19 = vrot.slane %v227_v11, %v963_v5  ;;  %vm284_vm5 = vcmask 785408   ;;  %s405_s28 = sshll.u32 %s203_s27, 4  ;;  %s982_s22 = scalar_lea.hbm %s1029_s3, %s509_s29  ;;  %s977_s28 = int_to_ptr.vmem [resolvable:$true] %s405_s28 }
  0x5e   : > { %s392_s7 = scalar_lea.sflag [#allocation4], %s949_s6  ;;  %s699_s8 = scalar_lea.vmem %s977_s28, 64 }
  0x5f   : > { %v242_v21 = vcombine.low %v234_v15, %v241_v19  ;;  %555 = vmatpush3.bf16.msra.mxu0 %v554_v20  ;;  %p700_p4 = scmp.ne.s32.totalorder %s977_s28, %s699_s8  ;;  %s787_s16 = smov [#allocation7]  }
  0x60   : > { %556 = vmatprep.subr.bf16.mxu0 %v778_v16  ;;  %s703_s9 = sshll.u32 %s787_s16, 4  ;;  %s704_s9 = int_to_ptr.vmem [resolvable:$false] %s703_s9 }
  0x61   : > { %v249_v24 = vrot.slane %v242_v21, %v963_v5  ;;  %p701_p6 = pnand %p700_p4, %p901_p12  ;;  %p706_p10 = scmp.lt.s32.totalorder %s977_s28, %s704_s9 }
  0x63   : > { %250 = vrot.lane.b32.xlu0 %v249_v24, %s779_s18  ;;  %258 = vrot.lane.b32.xlu1 %v249_v24, %s780_s20  ;;  %p702_p8 = pneg %p701_p6  ;;  %s705_s18 = scalar_lea.vmem %s704_s9, 128 }
  0x64   : > { %558 = vmatpush3.bf16.msra.mxu0 %v557_v25  ;;  %p707_p13 = scmp.lt.s32.totalorder %s705_s18, %s699_s8 }
  0x65   : > { %559 = vmatprep.subr.bf16.mxu0 %v778_v16 }
  0x66   : > { %p708_p3 = por %p707_p13, %p706_p10 }
  0x67   : > { %253 = vrot.lane.b32.xlu0 %v249_v24, %s781_s4  ;;  %261 = vrot.lane.b32.xlu1 %v249_v24, %s782_s25 }
  0x68   : > { %561 = vmatpush3.bf16.msra.mxu0 %v560_v28  ;;  %p709_p7 = pnand %p708_p3, %p702_p8 }
  0x69   : > { %562 = vmatprep.subr.bf16.mxu0 %v778_v16 }
  0x6b   : > { %266 = vrot.lane.b32.xlu0 %v249_v24, %s783_s26 }
  0x6c   : > { %564 = vmatpush3.bf16.msra.mxu0 %v563_v31 }
  0x6d   : > { %565 = vmatprep.subr.bf16.mxu0 %v778_v16 }
  0x70   : > { %567 = vmatpush3.bf16.msra.mxu0 %v566_v34 }
  0xd5   : > { %v251_v36 = vpop.permute.xlu0 %250  ;;  %v259_v39 = vpop.permute.xlu1 %258 }
  0xd9   : > { %v254_v37 = vpop.permute.xlu0 %253  ;;  %v262_v40 = vpop.permute.xlu1 %261 }
  0xda   : > { %v257_v38 = vsel %vm256_vm1, %v251_v36, %v254_v37  ;;  %v265_v41 = vsel %vm264_vm2, %v259_v39, %v262_v40 }
  0xdb   : > { %270 = vrot.lane.b32.xlu1 %v257_v38, %s786_s5 }
  0xdd   : > { %v267_v42 = vpop.permute.xlu0 %266 }
  0xde   : > { %v274_v43 = vsel %vm273_vm3, %v265_v41, %v267_v42 }
 0x14d   : > { %v271_v44 = vpop.permute.xlu1 %270 }
 0x14e   : > { %v276_v45 = vsel %vm275_vm4, %v274_v43, %v271_v44 }
 0x14f   : > { %548 = vmatmul.mubr.msk.f32.vlgmr.msra.gmra.mrb[0].mxu0 %vm284_vm5, %v276_v45 }
 0x222   : > { %v354_v47 = vpop.f32.mrb[0].mxu0 }
 0x223   : > { %v355_v48 = vadd.f32 %v499_v46, %v354_v47  ;;  %v549_v49 = vpop.f32.mrb[1].mxu0 }
 0x225   : > { %v365_v50 = vrot.slane %v355_v48, %v963_v5 }
 0x227   : > { %v366_v51 = vcombine.high %v365_v50, %v365_v50  ;;  %v373_v52 = vrot.slane %v365_v50, %v963_v5  ;;  %501 = vst.sshfl [vmem:[%s203_s27] sm:$0x1 pattern:$0x73625140] %v365_v50 }
 0x229   : > { %v380_v53 = vrot.slane %v366_v51, %v963_v5  ;;  %v381_v54 = vcombine.high %v373_v52, %v373_v52  ;;  %502 = vst.sshfl [vmem:[%s203_s27 + $0x1] sm:$0x1 pattern:$0x73625140] %v366_v51 }
 0x22b   : > { %v382_v55 = vcombine.high %v380_v53, %v380_v53  ;;  %389 = vst [vmem:[%s203_s27 + $0x2] sm:$0x1] %v381_v54 }
 0x22d   : > { %390 = vst [vmem:[%s203_s27 + $0x3] sm:$0x1] %v382_v55 }
 0x22e   : > { %712 = shalt.err (!%p709_p7)
}
 0x22f   : > { %s713_s20 = scalar_lea.hbm %s982_s22, 64  ;;  %s717_s26 = scalar_lea.hbm %s1029_s3, 128 }
 0x230   : > { %p714_p9 = scmp.ne.s32.totalorder %s982_s22, %s713_s20  ;;  %p718_p5 = scmp.lt.u32.totalorder %s982_s22, %s1029_s3 }
 0x231   : > { %p719_p11 = scmp.lt.u32.totalorder %s717_s26, %s713_s20  ;;  %p721_p4 = scmp.lt.u32.totalorder %s713_s20, %s982_s22 }
 0x232   : > { %p715_p2 = pnand %p714_p9, %p901_p12 }
 0x233   : > { %p720_p1 = por %p719_p11, %p718_p5 }
 0x234   : > { %p716_p0 = pneg %p715_p2 }
 0x235   : > { %p722_p6 = por %p721_p4, %p720_p1 }
 0x237   : > { %p723_p8 = pnand %p722_p6, %p716_p0 }
 0x239   : > { %726 = shalt.err (!%p723_p8)
}
 0x23a   : > { %s788_s11 = smov 16   ;;  %s789_s27 = smov 1  }
 0x23b   : > { %574 = dma.vmem_to_hbm [thread:$0]  (%p901_p12), %s977_s28, 64, %s982_s22, %s392_s7, %s788_s11, %s788_s11, %s789_s27  }
 0x23c PF: > { %s420_s29 = sand.u32 1, %s757_s12   ;;  %p1044_p10 = scmp.ne.s32.totalorder %s1034_s19, 0 }
 0x23d   : > { %p1045_p13 = scmp.ge.s32.totalorder %s769_s15, 2  ;;  %s421_s23 = scalar_lea.sflag [#allocation4], %s420_s29 }
 0x23f   : > { %p585_p3 = pnand %p1045_p13, %p1044_p10 }
 0x241   : > { %752 = dma.done.wait (!%p585_p3), %s421_s23, 64  }
 0x242   : > { %754 = vsyncadd (!%p585_p3), %s421_s23, 4294967232  ;;  %p17_p7 = scmp.ge.s32.totalorder %s866_s24, 4   ;;  %s1046_s12 = smov %s761_s13 }
 0x243   : > { %s1047_s13 = smov %s765_s14  ;;  %s1048_s14 = smov %s897_s17 }
 0x244   : > { %s1049_s15 = smov %s866_s24  ;;  %19 = sbr.rel (!%p17_p7) target bundleno = 6 (0x6), region = 81 }
 0x24b   :  { %426 = vsyncpa [#allocation3], 1 }
 0x24c   :  { %428 = vsyncpa [#allocation3 + $0x1], 1 }
 0x24d   :  { %429 = vsyncpa [#allocation6], 1 }
 0x24e   :  { %430 = vsyncpa [#allocation4], 1 }
 0x24f   :  { %432 = vsyncpa [#allocation4 + $0x1], 1 }

</bundles_post_ra>
